<compile_context>
chip_gen: v7x
topology: tpu7x:2x2x1
jax: 0.10.0
libtpu: 0.0.40
codegen_flags: <defaults>
</compile_context>

<pallas_src>
import functools

import jax
import jax.numpy as jnp
from jax.experimental import pallas as pl
from jax.experimental.pallas import tpu as pltpu

DPAD = 128          # lane-dense padded width for hidden / class axes
NEG_BIG = -1e30     # finite "minus infinity" for padded class lanes


def _round_up(n, m):
    return (n + m - 1) // m * m


def _pick_batch_tile(B, tb_max):
    """Large tiles for HBM-roofline efficiency, but keep >=2 grid steps for
    large batches so dimension_semantics='parallel' feeds both v7x TCs."""
    tb = min(tb_max, _round_up(B, 8))
    half = _round_up(pl.cdiv(B, 2), 8)
    if half >= 512:                 # halving still leaves big tiles -> split
        tb = min(tb, half)
    return max(tb, 8)


def guesser_kernel(alphas_ref,   # SMEM (3,) f32 PReLU slopes
                   x_ref,        # (tb, F_pad)      param_dtype (true feature width)
                   w_ref,        # (4, DPAD, DPAD)  param_dtype, packed weights
                   b_ref,        # (4, 1, DPAD)     f32, packed biases
                   out_ref):     # (tb, DPAD)       probabilities (lane-dense)
    f_in = x_ref.shape[-1]                           # static, 8-aligned

    # Layer 1: contract over the true feature width only (static W slice).
    z = jnp.dot(x_ref[...], w_ref[0, :f_in, :],
                preferred_element_type=jnp.float32) + b_ref[0]
    h = jnp.where(z >= 0.0, z, alphas_ref[0] * z).astype(w_ref.dtype)

    # Layers 2-3 (lane-dense 128-wide hidden path; f32 elementwise PReLU).
    for l in (1, 2):
        z = jnp.dot(h, w_ref[l], preferred_element_type=jnp.float32) + b_ref[l]
        h = jnp.where(z >= 0.0, z, alphas_ref[l] * z).astype(w_ref.dtype)

    # Final linear; padded class lanes carry a -1e30 bias -> exp() == 0.
    logits = jnp.dot(h, w_ref[3], preferred_element_type=jnp.float32) + b_ref[3]

    # Numerically-stable softmax with an EXACT divide so rows sum to 1 to f32
    # precision (the approx vrcp drifted ~1e-3, which matters for log-probs).
    m = jnp.max(logits, axis=-1, keepdims=True)
    e = jnp.exp(logits - m)
    s = jnp.sum(e, axis=-1, keepdims=True)
    out_ref[...] = (e / s).astype(out_ref.dtype)


def pack_params(params, param_dtype=jnp.float32):
    """Pack 4 (in,out) weights into a (4,128,128) slab and biases into (4,1,128).

    Call ONCE per parameter update (not per forward); guesser_forward consumes
    the packed slabs directly, so no per-call re-packing/staging ops run.
    """
    F, H = params["w1"].shape
    C = params["wl"].shape[1]
    assert F <= DPAD and H <= DPAD and C <= DPAD

    W = jnp.zeros((4, DPAD, DPAD), jnp.float32)
    W = W.at[0, :F, :H].set(params["w1"])
    W = W.at[1, :H, :H].set(params["w2"])
    W = W.at[2, :H, :H].set(params["w3"])
    W = W.at[3, :H, :C].set(params["wl"])

    b = jnp.zeros((4, 1, DPAD), jnp.float32)
    b = b.at[0, :, :H].set(params["b1"])
    b = b.at[1, :, :H].set(params["b2"])
    b = b.at[2, :, :H].set(params["b3"])
    b = b.at[3, :, :].set(NEG_BIG)                 # mask padded class lanes
    b = b.at[3, :, :C].set(params["bl"])

    return W.astype(param_dtype), b, params["alphas"]   # biases stay f32 (tiny)


@functools.partial(jax.jit,
                   static_argnames=("num_classes", "out_dtype", "tb_max"))
def guesser_forward(x, W, b, alphas, *, num_classes,
                    out_dtype=jnp.float32, tb_max=1024):
    B, F = x.shape
    F_pad = _round_up(F, 8)                        # sublane-aligned K for layer 1

    tb = _pick_batch_tile(B, tb_max)
    B_pad = _round_up(B, tb)
    if (B_pad, F_pad) != (B, F):                   # only pad when actually needed
        x = jnp.pad(x, ((0, B_pad - B), (0, F_pad - F)))
    x = x.astype(W.dtype)                          # MXU feed dtype (f32 or bf16)

    grid = (B_pad // tb,)

    # Footprint-based VMEM budget (double-buffered blocks + kernel temporaries),
    # kept small so this kernel doesn't squeeze neighbours on v7x (64 MiB VMEM).
    est = (2 * tb * DPAD * jnp.dtype(out_dtype).itemsize        # out blocks
           + 2 * tb * F_pad * jnp.dtype(W.dtype).itemsize       # x blocks
           + 2 * 4 * DPAD * DPAD * jnp.dtype(W.dtype).itemsize  # W slab
           + 8 * tb * DPAD * 4)                                 # f32 temporaries
    vmem_limit = max(8 * 1024 * 1024, int(2 * est))

    out = pl.pallas_call(
        guesser_kernel,
        out_shape=jax.ShapeDtypeStruct((B_pad, DPAD), out_dtype),
        grid_spec=pltpu.PrefetchScalarGridSpec(
            num_scalar_prefetch=0,
            grid=grid,
            in_specs=[
                pl.BlockSpec(memory_space=pltpu.MemorySpace.SMEM),    # alphas (3,)
                pl.BlockSpec((tb, F_pad), lambda i: (i, 0)),          # x tile (true width)
                pl.BlockSpec((4, DPAD, DPAD), lambda i: (0, 0, 0)),   # packed W (resident)
                pl.BlockSpec((4, 1, DPAD), lambda i: (0, 0, 0)),      # packed b (resident)
            ],
            out_specs=pl.BlockSpec((tb, DPAD), lambda i: (i, 0)),     # lane-dense out
        ),
        compiler_params=pltpu.CompilerParams(
            dimension_semantics=("parallel",),   # batch axis -> megacore when grid > 1
            vmem_limit_bytes=vmem_limit,
        ),
    )(alphas, x, W, b)

    return out[:B, :num_classes]


def init_params(key, features_size, hidden_dim, num_classes):
    """Deterministic synthetic weights (shapes match the PyTorch module)."""
    ks = jax.random.split(key, 8)
    scale = 0.1

    def dense(kw, kb, fan_in, fan_out):
        w = scale * jax.random.normal(kw, (fan_in, fan_out), jnp.float32)
        bb = scale * jax.random.normal(kb, (1, fan_out), jnp.float32)
        return w, bb

    w1, b1 = dense(ks[0], ks[1], features_size, hidden_dim)
    w2, b2 = dense(ks[2], ks[3], hidden_dim, hidden_dim)
    w3, b3 = dense(ks[4], ks[5], hidden_dim, hidden_dim)
    wl, bl = dense(ks[6], ks[7], hidden_dim, num_classes)
    alphas = jnp.full((3,), 0.25, jnp.float32)      # torch.nn.PReLU() default init
    return dict(w1=w1, b1=b1, w2=w2, b2=b2, w3=w3, b3=b3,
                wl=wl, bl=bl, alphas=alphas)


def guesser_reference(x, p):
    """Pure-JAX reference mirroring the PyTorch forward (f32-precision matmuls)."""
    dot = functools.partial(jnp.dot, precision=jax.lax.Precision.HIGHEST)

    def prelu(z, a):
        return jnp.where(z >= 0.0, z, a * z)

    h = prelu(dot(x, p["w1"]) + p["b1"], p["alphas"][0])
    h = prelu(dot(h, p["w2"]) + p["b2"], p["alphas"][1])
    h = prelu(dot(h, p["w3"]) + p["b3"], p["alphas"][2])
    logits = dot(h, p["wl"]) + p["bl"]
    return jax.nn.softmax(logits, axis=-1)


if __name__ == "__main__":
    # Small shapes consistent with the module: (batch, features_size)
    BATCH, FEATURES, HIDDEN, NUM_CLASSES = 8, 16, 32, 2

    key = jax.random.PRNGKey(0)
    k_x, k_p = jax.random.split(key)
    x = jax.random.normal(k_x, (BATCH, FEATURES), jnp.float32)
    params = init_params(k_p, FEATURES, HIDDEN, NUM_CLASSES)

    ref = guesser_reference(x, params)

    # f32 parameter path: pack once (outside the per-forward jit), then run.
    W, b, alphas = pack_params(params, jnp.float32)
    probs = jax.block_until_ready(
        guesser_forward(x, W, b, alphas, num_classes=NUM_CLASSES))
    assert probs.shape == (BATCH, NUM_CLASSES)
    assert jnp.allclose(probs, ref, atol=2e-3, rtol=2e-3), "f32 mismatch vs reference"
    assert jnp.allclose(jnp.sum(probs, axis=-1), 1.0, atol=1e-3), \
        "softmax rows must sum to ~1"

    # bf16 storage path (recommended default on v5e: bf16 MXU feed, f32 accumulate)
    # with a bf16 lane-dense output (halves writeback traffic).
    Wb, bb, alphas_b = pack_params(params, jnp.bfloat16)
    probs_bf16 = jax.block_until_ready(
        guesser_forward(x, Wb, bb, alphas_b, num_classes=NUM_CLASSES,
                        out_dtype=jnp.bfloat16))
    assert probs_bf16.shape == (BATCH, NUM_CLASSES)
    assert jnp.allclose(probs_bf16.astype(jnp.float32), ref, atol=3e-2, rtol=3e-2), \
        "bf16 mismatch vs reference"

    print("KERNEL_OK")
</pallas_src>

<mosaic_0001>
module attributes {stable_mosaic.version = 11 : i64} {
  func.func @guesser_kernel(%arg0: i32, %arg1: memref<3xf32, #tpu.memory_space<smem>>, %arg2: memref<8x16xf32, #tpu.memory_space<vmem>>, %arg3: memref<4x128x128xf32, #tpu.memory_space<vmem>>, %arg4: memref<4x1x128xf32, #tpu.memory_space<vmem>>, %arg5: memref<8x128xf32, #tpu.memory_space<vmem>>) attributes {dimension_semantics = [#tpu.dimension_semantics<parallel>], iteration_bounds = array<i64: 1>, scalar_prefetch = 0 : i64, scratch_operands = 0 : i64, tpu.core_type = #tpu.core_type<tc>, window_params = [{transform_indices = @transform_0, window_bounds = array<i64: 3>}, {transform_indices = @transform_1, window_bounds = array<i64: 8, 16>}, {pipeline_mode = #tpu.pipeline_mode<synchronous>, transform_indices = @transform_2, window_bounds = array<i64: 4, 128, 128>}, {pipeline_mode = #tpu.pipeline_mode<synchronous>, transform_indices = @transform_3, window_bounds = array<i64: 4, 1, 128>}, {transform_indices = @transform_4, window_bounds = array<i64: 8, 128>}]} {
    %c0 = arith.constant 0 : index
    %c0_0 = arith.constant 0 : index
    %0 = vector.load %arg2[%c0, %c0_0] : memref<8x16xf32, #tpu.memory_space<vmem>>, vector<8x16xf32>
    %c0_1 = arith.constant 0 : index
    %c0_2 = arith.constant 0 : index
    %c0_3 = arith.constant 0 : index
    %1 = vector.load %arg3[%c0_1, %c0_2, %c0_3] : memref<4x128x128xf32, #tpu.memory_space<vmem>>, vector<1x16x128xf32>
    %2 = vector.shape_cast %1 : vector<1x16x128xf32> to vector<16x128xf32>
    %cst = arith.constant dense<0.000000e+00> : vector<8x128xf32>
    %3 = tpu.matmul %0, %2, %cst {dimension_numbers = #tpu.dot_dimension_numbers<[1], [0], [0], [1], [0, 0, 1, 1], [], []>} : vector<8x16xf32>, vector<16x128xf32>, vector<8x128xf32> -> vector<8x128xf32>
    %c0_4 = arith.constant 0 : index
    %c0_5 = arith.constant 0 : index
    %c0_6 = arith.constant 0 : index
    %4 = vector.load %arg4[%c0_4, %c0_5, %c0_6] : memref<4x1x128xf32, #tpu.memory_space<vmem>>, vector<1x1x128xf32>
    %5 = vector.shape_cast %4 : vector<1x1x128xf32> to vector<1x128xf32>
    %6 = vector.broadcast %5 : vector<1x128xf32> to vector<8x128xf32>
    %7 = arith.addf %3, %6 : vector<8x128xf32>
    %cst_7 = arith.constant 0.000000e+00 : f32
    %8 = vector.broadcast %cst_7 : f32 to vector<8x128xf32>
    %9 = arith.cmpf oge, %7, %8 : vector<8x128xf32>
    %c0_8 = arith.constant 0 : index
    %10 = memref.load %arg1[%c0_8] : memref<3xf32, #tpu.memory_space<smem>>
    %11 = vector.broadcast %10 : f32 to vector<8x128xf32>
    %12 = arith.mulf %11, %7 : vector<8x128xf32>
    %13 = arith.select %9, %7, %12 : vector<8x128xi1>, vector<8x128xf32>
    %c1 = arith.constant 1 : index
    %c0_9 = arith.constant 0 : index
    %c0_10 = arith.constant 0 : index
    %14 = vector.load %arg3[%c1, %c0_9, %c0_10] : memref<4x128x128xf32, #tpu.memory_space<vmem>>, vector<1x128x128xf32>
    %15 = vector.shape_cast %14 : vector<1x128x128xf32> to vector<128x128xf32>
    %cst_11 = arith.constant dense<0.000000e+00> : vector<8x128xf32>
    %16 = tpu.matmul %13, %15, %cst_11 {dimension_numbers = #tpu.dot_dimension_numbers<[1], [0], [0], [1], [0, 0, 1, 1], [], []>} : vector<8x128xf32>, vector<128x128xf32>, vector<8x128xf32> -> vector<8x128xf32>
    %c1_12 = arith.constant 1 : index
    %c0_13 = arith.constant 0 : index
    %c0_14 = arith.constant 0 : index
    %17 = vector.load %arg4[%c1_12, %c0_13, %c0_14] : memref<4x1x128xf32, #tpu.memory_space<vmem>>, vector<1x1x128xf32>
    %18 = vector.shape_cast %17 : vector<1x1x128xf32> to vector<1x128xf32>
    %19 = vector.broadcast %18 : vector<1x128xf32> to vector<8x128xf32>
    %20 = arith.addf %16, %19 : vector<8x128xf32>
    %cst_15 = arith.constant 0.000000e+00 : f32
    %21 = vector.broadcast %cst_15 : f32 to vector<8x128xf32>
    %22 = arith.cmpf oge, %20, %21 : vector<8x128xf32>
    %c1_16 = arith.constant 1 : index
    %23 = memref.load %arg1[%c1_16] : memref<3xf32, #tpu.memory_space<smem>>
    %24 = vector.broadcast %23 : f32 to vector<8x128xf32>
    %25 = arith.mulf %24, %20 : vector<8x128xf32>
    %26 = arith.select %22, %20, %25 : vector<8x128xi1>, vector<8x128xf32>
    %c2 = arith.constant 2 : index
    %c0_17 = arith.constant 0 : index
    %c0_18 = arith.constant 0 : index
    %27 = vector.load %arg3[%c2, %c0_17, %c0_18] : memref<4x128x128xf32, #tpu.memory_space<vmem>>, vector<1x128x128xf32>
    %28 = vector.shape_cast %27 : vector<1x128x128xf32> to vector<128x128xf32>
    %cst_19 = arith.constant dense<0.000000e+00> : vector<8x128xf32>
    %29 = tpu.matmul %26, %28, %cst_19 {dimension_numbers = #tpu.dot_dimension_numbers<[1], [0], [0], [1], [0, 0, 1, 1], [], []>} : vector<8x128xf32>, vector<128x128xf32>, vector<8x128xf32> -> vector<8x128xf32>
    %c2_20 = arith.constant 2 : index
    %c0_21 = arith.constant 0 : index
    %c0_22 = arith.constant 0 : index
    %30 = vector.load %arg4[%c2_20, %c0_21, %c0_22] : memref<4x1x128xf32, #tpu.memory_space<vmem>>, vector<1x1x128xf32>
    %31 = vector.shape_cast %30 : vector<1x1x128xf32> to vector<1x128xf32>
    %32 = vector.broadcast %31 : vector<1x128xf32> to vector<8x128xf32>
    %33 = arith.addf %29, %32 : vector<8x128xf32>
    %cst_23 = arith.constant 0.000000e+00 : f32
    %34 = vector.broadcast %cst_23 : f32 to vector<8x128xf32>
    %35 = arith.cmpf oge, %33, %34 : vector<8x128xf32>
    %c2_24 = arith.constant 2 : index
    %36 = memref.load %arg1[%c2_24] : memref<3xf32, #tpu.memory_space<smem>>
    %37 = vector.broadcast %36 : f32 to vector<8x128xf32>
    %38 = arith.mulf %37, %33 : vector<8x128xf32>
    %39 = arith.select %35, %33, %38 : vector<8x128xi1>, vector<8x128xf32>
    %c3 = arith.constant 3 : index
    %c0_25 = arith.constant 0 : index
    %c0_26 = arith.constant 0 : index
    %40 = vector.load %arg3[%c3, %c0_25, %c0_26] : memref<4x128x128xf32, #tpu.memory_space<vmem>>, vector<1x128x128xf32>
    %41 = vector.shape_cast %40 : vector<1x128x128xf32> to vector<128x128xf32>
    %cst_27 = arith.constant dense<0.000000e+00> : vector<8x128xf32>
    %42 = tpu.matmul %39, %41, %cst_27 {dimension_numbers = #tpu.dot_dimension_numbers<[1], [0], [0], [1], [0, 0, 1, 1], [], []>} : vector<8x128xf32>, vector<128x128xf32>, vector<8x128xf32> -> vector<8x128xf32>
    %c3_28 = arith.constant 3 : index
    %c0_29 = arith.constant 0 : index
    %c0_30 = arith.constant 0 : index
    %43 = vector.load %arg4[%c3_28, %c0_29, %c0_30] : memref<4x1x128xf32, #tpu.memory_space<vmem>>, vector<1x1x128xf32>
    %44 = vector.shape_cast %43 : vector<1x1x128xf32> to vector<1x128xf32>
    %45 = vector.broadcast %44 : vector<1x128xf32> to vector<8x128xf32>
    %46 = arith.addf %42, %45 : vector<8x128xf32>
    %cst_31 = arith.constant dense<0xFF800000> : vector<8xf32>
    %47 = vector.multi_reduction <maximumf>, %46, %cst_31 [1] : vector<8x128xf32> to vector<8xf32>
    %48 = vector.shape_cast %47 : vector<8xf32> to vector<8x1xf32>
    %49 = vector.broadcast %48 : vector<8x1xf32> to vector<8x128xf32>
    %50 = arith.subf %46, %49 : vector<8x128xf32>
    %51 = math.exp %50 : vector<8x128xf32>
    %cst_32 = arith.constant dense<0.000000e+00> : vector<8xf32>
    %52 = vector.multi_reduction <add>, %51, %cst_32 [1] : vector<8x128xf32> to vector<8xf32>
    %53 = vector.shape_cast %52 : vector<8xf32> to vector<8x1xf32>
    %54 = vector.broadcast %53 : vector<8x1xf32> to vector<8x128xf32>
    %55 = arith.divf %51, %54 : vector<8x128xf32>
    %c0_33 = arith.constant 0 : index
    %c0_34 = arith.constant 0 : index
    %56 = vector.load %arg5[%c0_33, %c0_34] : memref<8x128xf32, #tpu.memory_space<vmem>>, vector<8x128xf32>
    tpu.vector_store %arg5[%c0_33, %c0_34], %55 {strides = array<i32>} : memref<8x128xf32, #tpu.memory_space<vmem>>, vector<8x128xf32>,
    return
  }
  func.func @transform_0(%arg0: i32) -> i32 {
    %c0_i32 = arith.constant 0 : i32
    %c0_i32_0 = arith.constant 0 : i32
    return %c0_i32 : i32
  }
  func.func @transform_1(%arg0: i32) -> (i32, i32) {
    %c0_i32 = arith.constant 0 : i32
    %c0_i32_0 = arith.constant 0 : i32
    return %arg0, %c0_i32 : i32, i32
  }
  func.func @transform_2(%arg0: i32) -> (i32, i32, i32) {
    %c0_i32 = arith.constant 0 : i32
    %c0_i32_0 = arith.constant 0 : i32
    %c0_i32_1 = arith.constant 0 : i32
    %c0_i32_2 = arith.constant 0 : i32
    return %c0_i32, %c0_i32_0, %c0_i32_1 : i32, i32, i32
  }
  func.func @transform_3(%arg0: i32) -> (i32, i32, i32) {
    %c0_i32 = arith.constant 0 : i32
    %c0_i32_0 = arith.constant 0 : i32
    %c0_i32_1 = arith.constant 0 : i32
    %c0_i32_2 = arith.constant 0 : i32
    return %c0_i32, %c0_i32_0, %c0_i32_1 : i32, i32, i32
  }
  func.func @transform_4(%arg0: i32) -> (i32, i32) {
    %c0_i32 = arith.constant 0 : i32
    %c0_i32_0 = arith.constant 0 : i32
    return %arg0, %c0_i32 : i32, i32
  }
}

</mosaic_0001>

<bundles_post_ra>
// kernel: guesser_forward.1
= control target key start
LH: loop header
LB: loop body
LE: loop exit
PB: predicated region body
PF: predicated region fallthrough
CT: control target
= control target key end

     0   :  { %9 = vsyncpa [#allocation4], 0  ;;  %s890_s0 = inlined_call_operand.vmem [shape: f32[3], index: 0, kind: input, shape index: {}]   ;;  %s891_s1 = inlined_call_operand.hbm [shape: f32[8,16], index: 1, kind: input, shape index: {}]   ;;  %s892_s2 = inlined_call_operand.hbm [shape: f32[4,128,128], index: 2, kind: input, shape index: {}]   ;;  %s893_s3 = inlined_call_operand.vmem [shape: f32[4,1,128], index: 3, kind: input, shape index: {}]   ;;  %s894_s4 = inlined_call_operand.vmem [shape: f32[8,128], index: 4, kind: output, shape index: {}]  }
   0x1   :  { %10 = vsyncpa [#allocation3], 0  ;;  %s18_s17 = sshll.u32 %s890_s0, 4  ;;  %s19_s17 = int_to_ptr.vmem [resolvable:$true] %s18_s17 }
   0x2   :  { %11 = vsyncpa [#allocation7], 0  ;;  %s720_s18 = scalar_lea.vmem %s19_s17, 16  ;;  %p725_p1 = scmp.lt.s32.totalorder %s19_s17, %s19_s17 }
   0x3   :  { %p721_p0 = scmp.ne.s32.totalorder %s19_s17, %s720_s18  ;;  %p726_p2 = scmp.lt.s32.totalorder %s720_s18, %s720_s18 }
   0x5   :  { %p727_p3 = por %p726_p2, %p725_p1 }
   0x7   :  { %p728_p4 = pnand %p727_p3, %p721_p0 }
   0x9   :  { %731 = shalt.err (!%p728_p4)
}
   0xa   :  { %s782_s19 = smov [#allocation2]   ;;  %s783_s20 = smov [#allocation5]  }
   0xb   :  { %21 = dma.vmem_to_smem %s19_s17, 16, %s782_s19, [#allocation4]  }
   0xc   :  { %s28_s21 = sshll.u32 %s783_s20, 4  ;;  %s784_s22 = smov [#allocation6]   ;;  %s29_s21 = int_to_ptr.vmem [resolvable:$true] %s28_s21 }
   0xd   :  { %s37_s23 = sshll.u32 %s784_s22, 4  ;;  %s732_s0 = scalar_lea.hbm %s891_s1, 128  ;;  %s38_s23 = int_to_ptr.vmem [resolvable:$true] %s37_s23 }
   0xe   :  { %p733_p5 = scmp.ne.s32.totalorder %s891_s1, %s732_s0  ;;  %p736_p6 = scmp.lt.u32.totalorder %s732_s0, %s891_s1 }
  0x10   :  { %p738_p7 = pnand %p736_p6, %p733_p5 }
  0x12   :  { %741 = shalt.err (!%p738_p7)
}
  0x13   :  { %s742_s30 = scalar_lea.vmem %s29_s21, 128  ;;  %p747_p9 = scmp.lt.s32.totalorder %s29_s21, %s29_s21 }
  0x14   :  { %p743_p8 = scmp.ne.s32.totalorder %s29_s21, %s742_s30  ;;  %p748_p10 = scmp.lt.s32.totalorder %s742_s30, %s742_s30 }
  0x16   :  { %p749_p11 = por %p748_p10, %p747_p9 }
  0x18   :  { %p750_p12 = pnand %p749_p11, %p743_p8 }
  0x1a   :  { %753 = shalt.err (!%p750_p12)
}
  0x1b   :  { %31 = dma.hbm_to_vmem [thread:$0]  %s891_s1, 128, %s29_s21, [#allocation3]  }
  0x1c   :  { %s754_s9 = scalar_lea.hbm %s892_s2, 8192 }
  0x1d   :  { %p755_p13 = scmp.ne.s32.totalorder %s892_s2, %s754_s9  ;;  %p758_p0 = scmp.lt.u32.totalorder %s754_s9, %s892_s2 }
  0x1f   :  { %p760_p1 = pnand %p758_p0, %p755_p13 }
  0x21   :  { %763 = shalt.err (!%p760_p1)
}
  0x22   :  { %s764_s14 = scalar_lea.vmem %s38_s23, 8192  ;;  %p769_p3 = scmp.lt.s32.totalorder %s38_s23, %s38_s23 }
  0x23   :  { %p765_p2 = scmp.ne.s32.totalorder %s38_s23, %s764_s14  ;;  %p770_p4 = scmp.lt.s32.totalorder %s764_s14, %s764_s14 }
  0x25   :  { %p771_p5 = por %p770_p4, %p769_p3 }
  0x27   :  { %p772_p6 = pnand %p771_p5, %p765_p2 }
  0x29   :  { %775 = shalt.err (!%p772_p6)
}
  0x2a   :  { %s785_s1 = smov 128   ;;  %s786_s15 = smov 8  }
  0x2b   :  { %43 = dma.hbm_to_vmem [thread:$0]  %s892_s2, 8192, %s38_s23, [#allocation7], %s785_s1, %s785_s1, %s786_s15  }
  0x2c   :  { %776 = dma.done.wait [#allocation4], 16  }
  0x2d   :  { %777 = vsyncadd [#allocation4], 4294967280 }
  0x2e   :  { %778 = dma.done.wait [#allocation3], 128  }
  0x2f   :  { %779 = vsyncadd [#allocation3], 4294967168 }
  0x30   :  { %780 = dma.done.wait [#allocation7], 8192  }
  0x31   :  { %781 = vsyncadd [#allocation7], 4294959104 }
  0x32   :  { %55 = sfence }
  0x33   :  { %v57_v0 = vld [vmem:[#allocation6] sm:$0xff]  ;;  %v58_v1 = vld [vmem:[#allocation6 + $0x8] sm:$0xff]  ;;  %v787_v2 = vmov 0.0|0.0   ;;  %vm788_vm0 = vmmov 0   ;;  %v789_v4 = vmov 0.0   ;;  %v148_v7 = vld [vmem:[#allocation6 + $0x90] sm:$0xff] }
  0x34   :  { %633 = vmatprep.subr.bf16.mxu0 %v787_v2  ;;  %v634_v3 = vpack.c.bf16 %v58_v1, %v57_v0  ;;  %525 = vmatprep.mubr.msk.f32.mxu0 %vm788_vm0, %v789_v4  ;;  %v146_v5 = vld [vmem:[#allocation6 + $0x80] sm:$0xff]  ;;  %v147_v6 = vld [vmem:[#allocation6 + $0x88] sm:$0xff]  ;;  %v149_v9 = vld [vmem:[#allocation6 + $0x98] sm:$0xff]  ;;  %vm66_vm1 = vcmask 130048   ;;  %s141_s2 = sld [smem:[#allocation2]]  ;;  %s461_s20 = sld [smem:[#allocation2 + $0x1]] }
  0x35   :  { %636 = vmatprep.subr.bf16.mxu1 %v787_v2  ;;  %v637_v8 = vpack.c.bf16 %v147_v6, %v146_v5  ;;  %560 = vmatprep.mubr.msk.f32.mxu1 %vm788_vm0, %v789_v4  ;;  %v56_v10 = vld [vmem:[#allocation5] sm:$0xff]  ;;  %v640_v11 = vpack.c.bf16 %v149_v9, %v148_v7  ;;  %v150_v12 = vld [vmem:[#allocation6 + $0xa0] sm:$0xff]  ;;  %v151_v13 = vld [vmem:[#allocation6 + $0xa8] sm:$0xff]  ;;  %s464_s23 = sld [smem:[#allocation2 + $0x2]] }
  0x36   :  { %635 = vmatpush3.bf16.msra.mxu0 %v634_v3  ;;  %v643_v14 = vpack.c.bf16 %v151_v13, %v150_v12  ;;  %v152_v15 = vld [vmem:[#allocation6 + $0xb0] sm:$0xff]  ;;  %v153_v16 = vld [vmem:[#allocation6 + $0xb8] sm:$0xff]  ;;  %v154_v18 = vld [vmem:[#allocation6 + $0xc0] sm:$0xff] }
  0x37   :  { %638 = vmatpush3.bf16.msra.mxu1 %v637_v8  ;;  %660 = vmatprep.subr.bf16.mxu0 %v787_v2  ;;  %v646_v17 = vpack.c.bf16 %v153_v16, %v152_v15  ;;  %v155_v19 = vld [vmem:[#allocation6 + $0xc8] sm:$0xff]  ;;  %v156_v21 = vld [vmem:[#allocation6 + $0xd0] sm:$0xff]  ;;  %v157_v22 = vld [vmem:[#allocation6 + $0xd8] sm:$0xff] }
  0x38   :  { %639 = vmatprep.subr.bf16.mxu1 %v787_v2  ;;  %v649_v20 = vpack.c.bf16 %v155_v19, %v154_v18  ;;  %v652_v23 = vpack.c.bf16 %v157_v22, %v156_v21  ;;  %v158_v24 = vld [vmem:[#allocation6 + $0xe0] sm:$0xff]  ;;  %v159_v25 = vld [vmem:[#allocation6 + $0xe8] sm:$0xff]  ;;  %v160_v27 = vld [vmem:[#allocation6 + $0xf0] sm:$0xff] }
  0x39   :  { %526 = vmatmul.mubr.msk.f32.vlgmr.msra.gmra.mrb[0].mxu0 %vm66_vm1, %v56_v10  ;;  %v655_v26 = vpack.c.bf16 %v159_v25, %v158_v24  ;;  %v161_v28 = vld [vmem:[#allocation6 + $0xf8] sm:$0xff]  ;;  %v246_v30 = vld [vmem:[#allocation6 + $0x100] sm:$0xff]  ;;  %v247_v31 = vld [vmem:[#allocation6 + $0x108] sm:$0xff] }
  0x3a   :  { %595 = vmatprep.mubr.msk.f32.mxu0 %vm788_vm0, %v789_v4  ;;  %v658_v29 = vpack.c.bf16 %v161_v28, %v160_v27  ;;  %v248_v32 = vld [vmem:[#allocation6 + $0x110] sm:$0xff]  ;;  %v661_v33 = vpack.c.bf16 %v247_v31, %v246_v30  ;;  %v249_v34 = vld [vmem:[#allocation6 + $0x118] sm:$0xff]  ;;  %v250_v36 = vld [vmem:[#allocation6 + $0x120] sm:$0xff]  ;;  %v142_v53 = vstv %s141_s2  ;;  %v242_v21 = vstv %s461_s20 }
  0x3b   :  { %641 = vmatpush3.bf16.msra.mxu1 %v640_v11  ;;  %v664_v35 = vpack.c.bf16 %v249_v34, %v248_v32  ;;  %v251_v37 = vld [vmem:[#allocation6 + $0x128] sm:$0xff]  ;;  %v252_v39 = vld [vmem:[#allocation6 + $0x130] sm:$0xff]  ;;  %v253_v40 = vld [vmem:[#allocation6 + $0x138] sm:$0xff]  ;;  %v342_v30 = vstv %s464_s23 }
  0x3c   :  { %642 = vmatprep.subr.bf16.mxu1 %v787_v2  ;;  %662 = vmatpush3.bf16.msra.mxu0 %v661_v33  ;;  %v667_v38 = vpack.c.bf16 %v251_v37, %v250_v36  ;;  %v670_v41 = vpack.c.bf16 %v253_v40, %v252_v39  ;;  %v254_v42 = vld [vmem:[#allocation6 + $0x140] sm:$0xff]  ;;  %v255_v43 = vld [vmem:[#allocation6 + $0x148] sm:$0xff]  ;;  %v256_v45 = vld [vmem:[#allocation6 + $0x150] sm:$0xff] }
  0x3d   :  { %663 = vmatprep.subr.bf16.mxu0 %v787_v2  ;;  %v673_v44 = vpack.c.bf16 %v255_v43, %v254_v42  ;;  %v257_v46 = vld [vmem:[#allocation6 + $0x158] sm:$0xff]  ;;  %v258_v48 = vld [vmem:[#allocation6 + $0x160] sm:$0xff]  ;;  %v259_v49 = vld [vmem:[#allocation6 + $0x168] sm:$0xff] }
  0x3e   :  { %v676_v47 = vpack.c.bf16 %v257_v46, %v256_v45  ;;  %v679_v50 = vpack.c.bf16 %v259_v49, %v258_v48  ;;  %v457_v51 = vld [vmem:[%s893_s3] ss:$0 sm:$0xff]  ;;  %v260_v58 = vld [vmem:[#allocation6 + $0x170] sm:$0xff]  ;;  %v346_v61 = vld [vmem:[#allocation6 + $0x180] sm:$0xff] }
  0x3f   :  { %644 = vmatpush3.bf16.msra.mxu1 %v643_v14  ;;  %v261_v59 = vld [vmem:[#allocation6 + $0x178] sm:$0xff]  ;;  %v347_v62 = vld [vmem:[#allocation6 + $0x188] sm:$0xff]  ;;  %v348_v63 = vld [vmem:[#allocation6 + $0x190] sm:$0xff] }
  0x40   :  { %645 = vmatprep.subr.bf16.mxu1 %v787_v2  ;;  %665 = vmatpush3.bf16.msra.mxu0 %v664_v35  ;;  %v682_v60 = vpack.c.bf16 %v261_v59, %v260_v58  ;;  %v685_v0 = vpack.c.bf16 %v347_v62, %v346_v61  ;;  %v349_v1 = vld [vmem:[#allocation6 + $0x198] sm:$0xff]  ;;  %v350_v5 = vld [vmem:[#allocation6 + $0x1a0] sm:$0xff]  ;;  %v351_v6 = vld [vmem:[#allocation6 + $0x1a8] sm:$0xff] }
  0x41   :  { %666 = vmatprep.subr.bf16.mxu0 %v787_v2  ;;  %v688_v3 = vpack.c.bf16 %v349_v1, %v348_v63  ;;  %v691_v7 = vpack.c.bf16 %v351_v6, %v350_v5  ;;  %v353_v8 = vld [vmem:[#allocation6 + $0x1b8] sm:$0xff]  ;;  %v354_v10 = vld [vmem:[#allocation6 + $0x1c0] sm:$0xff]  ;;  %v355_v11 = vld [vmem:[#allocation6 + $0x1c8] sm:$0xff] }
  0x42   :  { %v697_v12 = vpack.c.bf16 %v355_v11, %v354_v10  ;;  %v356_v13 = vld [vmem:[#allocation6 + $0x1d0] sm:$0xff]  ;;  %v357_v14 = vld [vmem:[#allocation6 + $0x1d8] sm:$0xff]  ;;  %v358_v16 = vld [vmem:[#allocation6 + $0x1e0] sm:$0xff] }
  0x43   :  { %647 = vmatpush3.bf16.msra.mxu1 %v646_v17  ;;  %v700_v15 = vpack.c.bf16 %v357_v14, %v356_v13  ;;  %v359_v17 = vld [vmem:[#allocation6 + $0x1e8] sm:$0xff]  ;;  %v460_v19 = vld [vmem:[%s893_s3 + $0x1] ss:$0 sm:$0xff]  ;;  %v466_v35 = vld [vmem:[%s893_s3 + $0x3] ss:$0 sm:$0xff] }
  0x44   :  { %648 = vmatprep.subr.bf16.mxu1 %v787_v2  ;;  %668 = vmatpush3.bf16.msra.mxu0 %v667_v38  ;;  %v703_v18 = vpack.c.bf16 %v359_v17, %v358_v16  ;;  %v361_v27 = vld [vmem:[#allocation6 + $0x1f8] sm:$0xff] }
  0x45   :  { %669 = vmatprep.subr.bf16.mxu0 %v787_v2 }
  0x47   :  { %650 = vmatpush3.bf16.msra.mxu1 %v649_v20 }
  0x48   :  { %651 = vmatprep.subr.bf16.mxu1 %v787_v2  ;;  %671 = vmatpush3.bf16.msra.mxu0 %v670_v41 }
  0x49   :  { %672 = vmatprep.subr.bf16.mxu0 %v787_v2 }
  0x4b   :  { %653 = vmatpush3.bf16.msra.mxu1 %v652_v23 }
  0x4c   :  { %654 = vmatprep.subr.bf16.mxu1 %v787_v2  ;;  %674 = vmatpush3.bf16.msra.mxu0 %v673_v44 }
  0x4d   :  { %675 = vmatprep.subr.bf16.mxu0 %v787_v2 }
  0x4f   :  { %656 = vmatpush3.bf16.msra.mxu1 %v655_v26  ;;  %v360_v26 = vld [vmem:[#allocation6 + $0x1f0] sm:$0xff] }
  0x50   :  { %657 = vmatprep.subr.bf16.mxu1 %v787_v2  ;;  %677 = vmatpush3.bf16.msra.mxu0 %v676_v47  ;;  %v706_v28 = vpack.c.bf16 %v361_v27, %v360_v26 }
  0x51   :  { %678 = vmatprep.subr.bf16.mxu0 %v787_v2 }
  0x53   :  { %659 = vmatpush3.bf16.msra.mxu1 %v658_v29 }
  0x54   :  { %684 = vmatprep.subr.bf16.mxu1 %v787_v2  ;;  %680 = vmatpush3.bf16.msra.mxu0 %v679_v50 }
  0x55   :  { %681 = vmatprep.subr.bf16.mxu0 %v787_v2 }
  0x58   :  { %683 = vmatpush3.bf16.msra.mxu0 %v682_v60 }
 0x10c   :  { %v136_v52 = vpop.f32.mrb[0].mxu0 }
 0x10d   :  { %v137_v54 = vadd.f32 %v457_v51, %v136_v52  ;;  %v527_v55 = vpop.f32.mrb[1].mxu0 }
 0x10f   :  { %v143_v56 = vmul.f32 %v142_v53, %v137_v54  ;;  %vm140_vm2 = vcmp.ge.f32.partialorder %v137_v54, 0.0 }
 0x111   :  { %v144_v57 = vsel %vm140_vm2, %v137_v54, %v143_v56 }
 0x112   :  { %561 = vmatmul.mubr.f32.vlgmr.msra.gmra.mrb[0].mxu1 %v144_v57 }
 0x113   :  { %630 = vmatprep.mubr.msk.f32.mxu1 %vm788_vm0, %v789_v4  ;;  %686 = vmatpush3.bf16.msra.mxu1 %v685_v0  ;;  %v352_v4 = vld [vmem:[#allocation6 + $0x1b0] sm:$0xff] }
 0x114   :  { %687 = vmatprep.subr.bf16.mxu1 %v787_v2  ;;  %v694_v9 = vpack.c.bf16 %v353_v8, %v352_v4 }
 0x117   :  { %689 = vmatpush3.bf16.msra.mxu1 %v688_v3 }
 0x118   :  { %690 = vmatprep.subr.bf16.mxu1 %v787_v2 }
 0x11b   :  { %692 = vmatpush3.bf16.msra.mxu1 %v691_v7 }
 0x11c   :  { %693 = vmatprep.subr.bf16.mxu1 %v787_v2 }
 0x11f   :  { %695 = vmatpush3.bf16.msra.mxu1 %v694_v9 }
 0x120   :  { %696 = vmatprep.subr.bf16.mxu1 %v787_v2 }
 0x123   :  { %698 = vmatpush3.bf16.msra.mxu1 %v697_v12 }
 0x124   :  { %699 = vmatprep.subr.bf16.mxu1 %v787_v2 }
 0x127   :  { %701 = vmatpush3.bf16.msra.mxu1 %v700_v15 }
 0x128   :  { %702 = vmatprep.subr.bf16.mxu1 %v787_v2 }
 0x12b   :  { %704 = vmatpush3.bf16.msra.mxu1 %v703_v18 }
 0x12c   :  { %705 = vmatprep.subr.bf16.mxu1 %v787_v2  ;;  %v463_v2 = vld [vmem:[%s893_s3 + $0x2] ss:$0 sm:$0xff] }
 0x12f   :  { %707 = vmatpush3.bf16.msra.mxu1 %v706_v28 }
 0x1e5   :  { %v236_v20 = vpop.f32.mrb[0].mxu1 }
 0x1e6   :  { %v237_v22 = vadd.f32 %v460_v19, %v236_v20  ;;  %v562_v23 = vpop.f32.mrb[1].mxu1 }
 0x1e8   :  { %vm240_vm3 = vcmp.ge.f32.partialorder %v237_v22, 0.0  ;;  %v243_v24 = vmul.f32 %v242_v21, %v237_v22 }
 0x1ea   :  { %v244_v25 = vsel %vm240_vm3, %v237_v22, %v243_v24 }
 0x1eb   :  { %596 = vmatmul.mubr.f32.vlgmr.msra.gmra.mrb[2].mxu0 %v244_v25 }
 0x2be   :  { %v336_v29 = vpop.f32.mrb[2].mxu0 }
 0x2bf   :  { %v337_v31 = vadd.f32 %v463_v2, %v336_v29  ;;  %v597_v32 = vpop.f32.mrb[3].mxu0 }
 0x2c1   :  { %vm340_vm4 = vcmp.ge.f32.partialorder %v337_v31, 0.0  ;;  %v343_v33 = vmul.f32 %v342_v30, %v337_v31 }
 0x2c3   :  { %v344_v34 = vsel %vm340_vm4, %v337_v31, %v343_v33 }
 0x2c4   :  { %631 = vmatmul.mubr.f32.vlgmr.msra.gmra.mrb[2].mxu1 %v344_v34 }
 0x397   :  { %v436_v36 = vpop.f32.mrb[2].mxu1 }
 0x398   :  { %v437_v37 = vadd.f32 %v466_v35, %v436_v36  ;;  %v632_v38 = vpop.f32.mrb[3].mxu1 }
 0x39a   :  { %440 = vmax.xlane.f32.xlu0 %v437_v37 }
 0x427   :  { %v441_v39 = vpop.xlane.xlu0 %440 }
 0x428   :  { %v442_v40 = vsub.f32 %v437_v37, %v441_v39 }
 0x42a   :  { %v443_v41 = vmul.f32 1.442695, %v442_v40 }
 0x42c   :  { %716 = vpow2.f32 %v443_v41 }
 0x436   :  { %v717_v42 = vpop.eup %716 }
 0x437   :  { %445 = vadd.xlane.f32.xlu0 %v717_v42 }
 0x4c4   :  { %v446_v43 = vpop.xlane.xlu0 %445 }
 0x4c5   :  { %718 = vrcp.f32 %v446_v43 }
 0x4cf   :  { %v719_v44 = vpop.eup %718 }
 0x4d0   :  { %v448_v45 = vmul.f32 %v719_v44, %v717_v42 }
 0x4d2   :  { %449 = vst [vmem:[%s894_s4] sm:$0xff] %v448_v45 }
 0x4d3   :  { %454 = vsyncpa [#allocation3], 1 }
 0x4d4   :  { %455 = vsyncpa [#allocation7], 1 }
 0x4d5   :  { %456 = vsyncpa [#allocation4], 1 }

</bundles_post_ra>
